<compile_context>
chip_gen: v7x
topology: tpu7x:2x2x1
jax: 0.10.0
libtpu: 0.0.40
codegen_flags: <defaults>
</compile_context>

<pallas_src>
import jax
import jax.numpy as jnp
from jax.experimental import pallas as pl
from jax.experimental.pallas import tpu as pltpu

_LANE = 128      # lane width
_SUBLANE = 16    # bf16 sublane pack


def _round_up(n, m):
    return ((n + m - 1) // m) * m


def dqn_kernel(x_ref, w1_ref, b1_ref, w2_ref, b2_ref, w3_ref, b3_ref, out_ref):
    cdt = w1_ref.dtype
    x = x_ref[...].astype(cdt)                 # f32 streamed in, cast on VPU (free under DMA slack)

    # fc1 + relu  (bf16 MXU operands, f32 accumulate)
    h1 = jnp.dot(x, w1_ref[...], preferred_element_type=jnp.float32)
    h1 = jnp.maximum(h1 + b1_ref[...], 0.0).astype(cdt)

    # fc2 + relu
    h2 = jnp.dot(h1, w2_ref[...], preferred_element_type=jnp.float32)
    h2 = jnp.maximum(h2 + b2_ref[...], 0.0).astype(cdt)

    # fc3 (no activation)
    out = jnp.dot(h2, w3_ref[...], preferred_element_type=jnp.float32) + b3_ref[...]

    out_ref[...] = out.astype(out_ref.dtype)   # lane-dense (tb, 128) unmasked store


def prepare_params(params, compute_dtype=jnp.bfloat16):
    """One-time prep: zero-pad hidden/output dims to 128 lanes and cast the
    matmul operands to `compute_dtype`. Padding columns are exact zeros so the
    math is unchanged. Call once, reuse the result for every forward pass.

    Use compute_dtype=jnp.float32 if bitwise-stable Q-value argmax matters;
    the compute cost at these sizes is negligible either way."""
    state_dim, hidden = params["w1"].shape
    action_dim = params["w3"].shape[1]
    h_pad = _round_up(hidden, _LANE)
    out_pad = _round_up(action_dim, _LANE)

    return {
        "w1": jnp.pad(params["w1"], ((0, 0), (0, h_pad - hidden))).astype(compute_dtype),
        "b1": jnp.pad(params["b1"], ((0, 0), (0, h_pad - hidden))).astype(jnp.float32),
        "w2": jnp.pad(params["w2"], ((0, h_pad - hidden), (0, h_pad - hidden))).astype(compute_dtype),
        "b2": jnp.pad(params["b2"], ((0, 0), (0, h_pad - hidden))).astype(jnp.float32),
        "w3": jnp.pad(params["w3"], ((0, h_pad - hidden), (0, out_pad - action_dim))).astype(compute_dtype),
        "b3": jnp.pad(params["b3"], ((0, 0), (0, out_pad - action_dim))).astype(jnp.float32),
    }


def dqn_forward(x, prepared, *, action_dim, block_b=2048, out_dtype=jnp.bfloat16):
    """x: (B, state_dim) f32; prepared: output of prepare_params()."""
    B, state_dim = x.shape
    h_pad = prepared["w1"].shape[1]
    out_pad = prepared["w3"].shape[1]
    assert prepared["w1"].shape[0] == state_dim

    # Batch tile: multiple of 16 (bf16 sublane pack), capped at block_b.
    tb = min(block_b, _round_up(B, _SUBLANE))
    # Guarantee >=2 grid steps when the batch is big enough to split, so the
    # "parallel" batch axis actually uses both TensorCores on v7x.
    if B >= 2 * _SUBLANE and -(-B // tb) < 2:
        tb = _round_up(-(-B // 2), _SUBLANE)
    B_pad = _round_up(B, tb)

    x_in = x if B_pad == B else jnp.pad(x, ((0, B_pad - B), (0, 0)))

    grid = (B_pad // tb,)
    resident = lambda arr: pl.BlockSpec(arr.shape, lambda i: (0, 0))  # stays in VMEM

    itemsize = lambda a: jnp.dtype(a.dtype).itemsize
    flops = 2 * B_pad * (state_dim * h_pad + h_pad * h_pad + h_pad * out_pad)
    bytes_accessed = (
        x_in.size * itemsize(x_in)
        + sum(prepared[k].size * itemsize(prepared[k]) for k in ("w1", "b1", "w2", "b2", "w3", "b3"))
        + B_pad * out_pad * jnp.dtype(out_dtype).itemsize
    )

    out = pl.pallas_call(
        dqn_kernel,
        out_shape=jax.ShapeDtypeStruct((B_pad, out_pad), out_dtype),
        grid=grid,
        in_specs=[
            pl.BlockSpec((tb, state_dim), lambda i: (i, 0)),   # streams over batch
            resident(prepared["w1"]), resident(prepared["b1"]),
            resident(prepared["w2"]), resident(prepared["b2"]),
            resident(prepared["w3"]), resident(prepared["b3"]),
        ],
        out_specs=pl.BlockSpec((tb, out_pad), lambda i: (i, 0)),
        compiler_params=pltpu.CompilerParams(
            dimension_semantics=("parallel",),                 # shards batch across TCs (v7x)
        ),
        cost_estimate=pl.CostEstimate(
            flops=flops, transcendentals=0, bytes_accessed=bytes_accessed
        ),
    )(x_in, prepared["w1"], prepared["b1"], prepared["w2"], prepared["b2"],
      prepared["w3"], prepared["b3"])

    return out[:B, :action_dim]


def init_dqn_params(key, state_dim, action_dim, hidden=64):
    """PyTorch nn.Linear-style init (uniform +-1/sqrt(fan_in)).
    Weights stored (in, out); biases (1, out)."""
    keys = jax.random.split(key, 6)

    def linear(kw, kb, fan_in, fan_out):
        bound = 1.0 / jnp.sqrt(jnp.float32(fan_in))
        w = jax.random.uniform(kw, (fan_in, fan_out), jnp.float32, -bound, bound)
        b = jax.random.uniform(kb, (1, fan_out), jnp.float32, -bound, bound)
        return w, b

    w1, b1 = linear(keys[0], keys[1], state_dim, hidden)
    w2, b2 = linear(keys[2], keys[3], hidden, hidden)
    w3, b3 = linear(keys[4], keys[5], hidden, action_dim)
    return {"w1": w1, "b1": b1, "w2": w2, "b2": b2, "w3": w3, "b3": b3}


def dqn_reference_f32(x, p):
    """Pure-JAX f32 reference of the original module's forward."""
    h1 = jnp.maximum(x @ p["w1"] + p["b1"], 0.0)
    h2 = jnp.maximum(h1 @ p["w2"] + p["b2"], 0.0)
    return h2 @ p["w3"] + p["b3"]


def dqn_reference_bf16(x, p):
    """Pure-JAX reference with the kernel's bf16-operand / f32-accumulate / bf16-out recipe."""
    xb = x.astype(jnp.bfloat16)
    h1 = jnp.dot(xb, p["w1"].astype(jnp.bfloat16), preferred_element_type=jnp.float32) + p["b1"]
    h1 = jnp.maximum(h1, 0.0).astype(jnp.bfloat16)
    h2 = jnp.dot(h1, p["w2"].astype(jnp.bfloat16), preferred_element_type=jnp.float32) + p["b2"]
    h2 = jnp.maximum(h2, 0.0).astype(jnp.bfloat16)
    out = jnp.dot(h2, p["w3"].astype(jnp.bfloat16), preferred_element_type=jnp.float32) + p["b3"]
    return out.astype(jnp.bfloat16)


if __name__ == "__main__":
    key = jax.random.PRNGKey(0)
    k_params, k_x = jax.random.split(key)

    batch = 32
    state_dim = 16
    action_dim = 4

    params = init_dqn_params(k_params, state_dim, action_dim)
    x = jax.random.normal(k_x, (batch, state_dim), jnp.float32)

    prepared = prepare_params(params)                      # one-time pad + bf16 cast
    dqn_apply = jax.jit(dqn_forward,
                        static_argnames=("action_dim", "block_b", "out_dtype"))

    out = dqn_apply(x, prepared, action_dim=action_dim)
    out = jax.block_until_ready(out)

    assert out.shape == (batch, action_dim), out.shape
    out_f32 = out.astype(jnp.float32)

    # Tight check against a reference using the same bf16/f32-accum recipe.
    ref_bf16 = dqn_reference_bf16(x, params).astype(jnp.float32)
    assert jnp.allclose(out_f32, ref_bf16, atol=1e-2, rtol=1e-2), "mismatch vs bf16 reference"

    # Looser check against the original full-f32 semantics.
    ref_f32 = dqn_reference_f32(x, params)
    assert jnp.allclose(out_f32, ref_f32, atol=5e-2, rtol=5e-2), "mismatch vs f32 reference"

    print("KERNEL_OK")
</pallas_src>

<mosaic_0001>
module attributes {stable_mosaic.version = 11 : i64} {
  func.func @dqn_kernel(%arg0: i32, %arg1: memref<16x16xf32, #tpu.memory_space<vmem>>, %arg2: memref<16x128xbf16, #tpu.memory_space<vmem>>, %arg3: memref<1x128xf32, #tpu.memory_space<vmem>>, %arg4: memref<128x128xbf16, #tpu.memory_space<vmem>>, %arg5: memref<1x128xf32, #tpu.memory_space<vmem>>, %arg6: memref<128x128xbf16, #tpu.memory_space<vmem>>, %arg7: memref<1x128xf32, #tpu.memory_space<vmem>>, %arg8: memref<16x128xbf16, #tpu.memory_space<vmem>>) attributes {dimension_semantics = [#tpu.dimension_semantics<parallel>], iteration_bounds = array<i64: 2>, scalar_prefetch = 0 : i64, scratch_operands = 0 : i64, tpu.core_type = #tpu.core_type<tc>, window_params = [{transform_indices = @transform_0, window_bounds = array<i64: 16, 16>}, {pipeline_mode = #tpu.pipeline_mode<synchronous>, transform_indices = @transform_1, window_bounds = array<i64: 16, 128>}, {pipeline_mode = #tpu.pipeline_mode<synchronous>, transform_indices = @transform_2, window_bounds = array<i64: 1, 128>}, {pipeline_mode = #tpu.pipeline_mode<synchronous>, transform_indices = @transform_3, window_bounds = array<i64: 128, 128>}, {pipeline_mode = #tpu.pipeline_mode<synchronous>, transform_indices = @transform_4, window_bounds = array<i64: 1, 128>}, {pipeline_mode = #tpu.pipeline_mode<synchronous>, transform_indices = @transform_5, window_bounds = array<i64: 128, 128>}, {pipeline_mode = #tpu.pipeline_mode<synchronous>, transform_indices = @transform_6, window_bounds = array<i64: 1, 128>}, {transform_indices = @transform_7, window_bounds = array<i64: 16, 128>}]} {
    %c0 = arith.constant 0 : index
    %c0_0 = arith.constant 0 : index
    %0 = vector.load %arg1[%c0, %c0_0] : memref<16x16xf32, #tpu.memory_space<vmem>>, vector<16x16xf32>
    %1 = arith.truncf %0 : vector<16x16xf32> to vector<16x16xbf16>
    %c0_1 = arith.constant 0 : index
    %c0_2 = arith.constant 0 : index
    %2 = vector.load %arg2[%c0_1, %c0_2] : memref<16x128xbf16, #tpu.memory_space<vmem>>, vector<16x128xbf16>
    %cst = arith.constant dense<0.000000e+00> : vector<16x128xf32>
    %3 = tpu.matmul %1, %2, %cst {dimension_numbers = #tpu.dot_dimension_numbers<[1], [0], [0], [1], [0, 0, 1, 1], [], []>} : vector<16x16xbf16>, vector<16x128xbf16>, vector<16x128xf32> -> vector<16x128xf32>
    %c0_3 = arith.constant 0 : index
    %c0_4 = arith.constant 0 : index
    %4 = vector.load %arg3[%c0_3, %c0_4] : memref<1x128xf32, #tpu.memory_space<vmem>>, vector<1x128xf32>
    %5 = vector.broadcast %4 : vector<1x128xf32> to vector<16x128xf32>
    %6 = arith.addf %3, %5 : vector<16x128xf32>
    %cst_5 = arith.constant 0.000000e+00 : f32
    %7 = vector.broadcast %cst_5 : f32 to vector<16x128xf32>
    %8 = arith.maximumf %6, %7 : vector<16x128xf32>
    %9 = arith.truncf %8 : vector<16x128xf32> to vector<16x128xbf16>
    %c0_6 = arith.constant 0 : index
    %c0_7 = arith.constant 0 : index
    %10 = vector.load %arg4[%c0_6, %c0_7] : memref<128x128xbf16, #tpu.memory_space<vmem>>, vector<128x128xbf16>
    %cst_8 = arith.constant dense<0.000000e+00> : vector<16x128xf32>
    %11 = tpu.matmul %9, %10, %cst_8 {dimension_numbers = #tpu.dot_dimension_numbers<[1], [0], [0], [1], [0, 0, 1, 1], [], []>} : vector<16x128xbf16>, vector<128x128xbf16>, vector<16x128xf32> -> vector<16x128xf32>
    %c0_9 = arith.constant 0 : index
    %c0_10 = arith.constant 0 : index
    %12 = vector.load %arg5[%c0_9, %c0_10] : memref<1x128xf32, #tpu.memory_space<vmem>>, vector<1x128xf32>
    %13 = vector.broadcast %12 : vector<1x128xf32> to vector<16x128xf32>
    %14 = arith.addf %11, %13 : vector<16x128xf32>
    %cst_11 = arith.constant 0.000000e+00 : f32
    %15 = vector.broadcast %cst_11 : f32 to vector<16x128xf32>
    %16 = arith.maximumf %14, %15 : vector<16x128xf32>
    %17 = arith.truncf %16 : vector<16x128xf32> to vector<16x128xbf16>
    %c0_12 = arith.constant 0 : index
    %c0_13 = arith.constant 0 : index
    %18 = vector.load %arg6[%c0_12, %c0_13] : memref<128x128xbf16, #tpu.memory_space<vmem>>, vector<128x128xbf16>
    %cst_14 = arith.constant dense<0.000000e+00> : vector<16x128xf32>
    %19 = tpu.matmul %17, %18, %cst_14 {dimension_numbers = #tpu.dot_dimension_numbers<[1], [0], [0], [1], [0, 0, 1, 1], [], []>} : vector<16x128xbf16>, vector<128x128xbf16>, vector<16x128xf32> -> vector<16x128xf32>
    %c0_15 = arith.constant 0 : index
    %c0_16 = arith.constant 0 : index
    %20 = vector.load %arg7[%c0_15, %c0_16] : memref<1x128xf32, #tpu.memory_space<vmem>>, vector<1x128xf32>
    %21 = vector.broadcast %20 : vector<1x128xf32> to vector<16x128xf32>
    %22 = arith.addf %19, %21 : vector<16x128xf32>
    %23 = arith.truncf %22 : vector<16x128xf32> to vector<16x128xbf16>
    %c0_17 = arith.constant 0 : index
    %c0_18 = arith.constant 0 : index
    %24 = vector.load %arg8[%c0_17, %c0_18] : memref<16x128xbf16, #tpu.memory_space<vmem>>, vector<16x128xbf16>
    tpu.vector_store %arg8[%c0_17, %c0_18], %23 {strides = array<i32>} : memref<16x128xbf16, #tpu.memory_space<vmem>>, vector<16x128xbf16>,
    return
  }
  func.func @transform_0(%arg0: i32) -> (i32, i32) {
    %c0_i32 = arith.constant 0 : i32
    %c0_i32_0 = arith.constant 0 : i32
    return %arg0, %c0_i32 : i32, i32
  }
  func.func @transform_1(%arg0: i32) -> (i32, i32) {
    %c0_i32 = arith.constant 0 : i32
    %c0_i32_0 = arith.constant 0 : i32
    %c0_i32_1 = arith.constant 0 : i32
    return %c0_i32, %c0_i32_0 : i32, i32
  }
  func.func @transform_2(%arg0: i32) -> (i32, i32) {
    %c0_i32 = arith.constant 0 : i32
    %c0_i32_0 = arith.constant 0 : i32
    %c0_i32_1 = arith.constant 0 : i32
    return %c0_i32, %c0_i32_0 : i32, i32
  }
  func.func @transform_3(%arg0: i32) -> (i32, i32) {
    %c0_i32 = arith.constant 0 : i32
    %c0_i32_0 = arith.constant 0 : i32
    %c0_i32_1 = arith.constant 0 : i32
    return %c0_i32, %c0_i32_0 : i32, i32
  }
  func.func @transform_4(%arg0: i32) -> (i32, i32) {
    %c0_i32 = arith.constant 0 : i32
    %c0_i32_0 = arith.constant 0 : i32
    %c0_i32_1 = arith.constant 0 : i32
    return %c0_i32, %c0_i32_0 : i32, i32
  }
  func.func @transform_5(%arg0: i32) -> (i32, i32) {
    %c0_i32 = arith.constant 0 : i32
    %c0_i32_0 = arith.constant 0 : i32
    %c0_i32_1 = arith.constant 0 : i32
    return %c0_i32, %c0_i32_0 : i32, i32
  }
  func.func @transform_6(%arg0: i32) -> (i32, i32) {
    %c0_i32 = arith.constant 0 : i32
    %c0_i32_0 = arith.constant 0 : i32
    %c0_i32_1 = arith.constant 0 : i32
    return %c0_i32, %c0_i32_0 : i32, i32
  }
  func.func @transform_7(%arg0: i32) -> (i32, i32) {
    %c0_i32 = arith.constant 0 : i32
    %c0_i32_0 = arith.constant 0 : i32
    return %arg0, %c0_i32 : i32, i32
  }
}

</mosaic_0001>

<bundles_post_ra>
// kernel: dqn_forward.1
= control target key start
LH: loop header
LB: loop body
LE: loop exit
PB: predicated region body
PF: predicated region fallthrough
CT: control target
= control target key end

     0   :  { %12 = vsyncpa [#allocation3], 0  ;;  %s1214_s0 = inlined_call_operand.vmem [shape: f32[32,16], index: 0, kind: input, shape index: {}]   ;;  %s1215_s1 = inlined_call_operand.hbm [shape: bf16[16,128], index: 1, kind: input, shape index: {}]   ;;  %s1216_s2 = inlined_call_operand.vmem [shape: f32[1,128], index: 2, kind: input, shape index: {}]   ;;  %s1217_s3 = inlined_call_operand.vmem [shape: bf16[128,128], index: 3, kind: input, shape index: {}]   ;;  %s1218_s4 = inlined_call_operand.vmem [shape: f32[1,128], index: 4, kind: input, shape index: {}]   ;;  %s1219_s5 = inlined_call_operand.hbm [shape: bf16[128,128], index: 5, kind: input, shape index: {}]   ;;  %s1220_s6 = inlined_call_operand.hbm [shape: f32[1,128], index: 6, kind: input, shape index: {}]   ;;  %s1221_s7 = inlined_call_operand.vmem [shape: bf16[32,128], index: 7, kind: output, shape index: {}]  }
   0x1   :  { %13 = vsyncpa [#allocation5], 0  ;;  %s1035_s24 = smov 0  }
   0x2 LB: > { %s715_s25 = sadd.s32 4294967295, %s986_s24   ;;  %p717_p0 = scmp.ge.s32.totalorder %s986_s24, 1  ;;  %s986_s24 = sphi %s1035_s24, %s19_s24  }
   0x3   : > { %p202_p1 = scmp.lt.s32.totalorder %s986_s24, 3  ;;  %p1045_p2 = scmp.eq.s32.totalorder %s715_s25, 0 }
   0x4   : > { %s988_s28 = smov [#allocation4]   ;;  %s989_s30 = smov [#allocation2]  }
   0x5   : > { %s1225_s26 = scalar_select %p1045_p2, 1, 0 }
   0x6   : > { %p1049_p3 = pnand %p717_p0, %p202_p1  ;;  %s236_s29 = sshll.u32 %s988_s28, 4  ;;  %s237_s29 = int_to_ptr.vmem [resolvable:$true] %s236_s29 }
   0x7   : > { %s214_s8 = sshll.u32 %s989_s30, 4  ;;  %s990_s10 = smov [#allocation6]   ;;  %s1061_s8 = int_to_ptr.vmem [resolvable:$true] %s214_s8 }
   0x8   : > { %s1226_s27 = scalar_select %p1049_p3, 1, 0 }
   0x9   : > { %p840_p4 = pneg %p1049_p3  ;;  %s250_s11 = sshll.u32 %s990_s10, 4  ;;  %s1063_s11 = int_to_ptr.vmem [resolvable:$true] %s250_s11 }
   0xa   : > { %s888_s14 = scalar_lea.hbm %s1219_s5, 1024 }
   0xb   : > { %p1057_p5 = pnand %p1045_p2, %p840_p4  ;;  %p889_p6 = scmp.ne.s32.totalorder %s1219_s5, %s888_s14 }
   0xc   : > { %p895_p10 = scmp.lt.u32.totalorder %s888_s14, %s1219_s5 }
   0xd   : > { %p1073_p7 = pneg %p1057_p5 }
   0xf   : > { %p891_p8 = pnand %p1073_p7, %p889_p6 }
  0x11   : > { %p892_p9 = pneg %p891_p8 }
  0x13   : > { %p897_p11 = pnand %p895_p10, %p892_p9 }
  0x15   : > { %900 = shalt.err (!%p897_p11)
}
  0x16   : > { %s901_s20 = scalar_lea.vmem %s237_s29, 1024  ;;  %p909_p1 = scmp.lt.s32.totalorder %s237_s29, %s237_s29 }
  0x17   : > { %p902_p12 = scmp.ne.s32.totalorder %s237_s29, %s901_s20  ;;  %p910_p4 = scmp.lt.s32.totalorder %s901_s20, %s901_s20 }
  0x19   : > { %p904_p13 = pnand %p902_p12, %p1073_p7  ;;  %p911_p2 = por %p910_p4, %p909_p1 }
  0x1b   : > { %p905_p0 = pneg %p904_p13 }
  0x1d   : > { %p912_p3 = pnand %p911_p2, %p905_p0 }
  0x1f   : > { %915 = shalt.err (!%p912_p3)
}
  0x20   : > { %s991_s21 = smov 64   ;;  %s992_s22 = smov 4  }
  0x21   : > { %846 = dma.hbm_to_vmem [thread:$0]  (!%p1057_p5), %s1219_s5, 1024, %s237_s29, [#allocation5], %s991_s21, %s991_s21, %s992_s22  }
  0x22   : > { %s916_s12 = scalar_lea.hbm %s1215_s1, 128 }
  0x23   : > { %p917_p6 = scmp.ne.s32.totalorder %s1215_s1, %s916_s12  ;;  %p923_p8 = scmp.lt.u32.totalorder %s916_s12, %s1215_s1 }
  0x25   : > { %p919_p2 = pnand %p917_p6, %p1073_p7 }
  0x27   : > { %p920_p3 = pneg %p919_p2 }
  0x29   : > { %p925_p9 = pnand %p923_p8, %p920_p3 }
  0x2b   : > { %928 = shalt.err (!%p925_p9)
}
  0x2c   : > { %s929_s29 = scalar_lea.vmem %s1061_s8, 128  ;;  %p937_p13 = scmp.lt.s32.totalorder %s1061_s8, %s1061_s8 }
  0x2d   : > { %p930_p10 = scmp.ne.s32.totalorder %s1061_s8, %s929_s29  ;;  %p938_p0 = scmp.lt.s32.totalorder %s929_s29, %s929_s29 }
  0x2f   : > { %p932_p11 = pnand %p930_p10, %p1073_p7  ;;  %p939_p1 = por %p938_p0, %p937_p13 }
  0x31   : > { %p933_p12 = pneg %p932_p11 }
  0x33   : > { %p940_p4 = pnand %p939_p1, %p933_p12 }
  0x35   : > { %943 = shalt.err (!%p940_p4)
}
  0x36   : > { %843 = dma.hbm_to_vmem [thread:$0]  (!%p1057_p5), %s1215_s1, 128, %s1061_s8, [#allocation3], %s991_s21, %s991_s21, %s992_s22  }
  0x37   : > { %s944_s28 = scalar_lea.hbm %s1220_s6, 16 }
  0x38   : > { %p945_p6 = scmp.ne.s32.totalorder %s1220_s6, %s944_s28  ;;  %p951_p8 = scmp.lt.u32.totalorder %s944_s28, %s1220_s6 }
  0x3a   : > { %p947_p2 = pnand %p945_p6, %p1073_p7 }
  0x3c   : > { %p948_p3 = pneg %p947_p2 }
  0x3e   : > { %p953_p9 = pnand %p951_p8, %p948_p3 }
  0x40   : > { %956 = shalt.err (!%p953_p9)
}
  0x41   : > { %s957_s8 = scalar_lea.vmem %s1063_s11, 16  ;;  %s964_s21 = scalar_lea.vmem %s1063_s11, 32 }
  0x42   : > { %p958_p10 = scmp.ne.s32.totalorder %s1063_s11, %s957_s8  ;;  %p965_p13 = scmp.lt.s32.totalorder %s1063_s11, %s1063_s11 }
  0x43   : > { %p966_p0 = scmp.lt.s32.totalorder %s964_s21, %s957_s8 }
  0x44   : > { %p960_p11 = pnand %p958_p10, %p1073_p7 }
  0x45   : > { %p967_p1 = por %p966_p0, %p965_p13 }
  0x46   : > { %p961_p12 = pneg %p960_p11 }
  0x48   : > { %p968_p4 = pnand %p967_p1, %p961_p12 }
  0x4a   : > { %971 = shalt.err (!%p968_p4)
}
  0x4b   : > { %849 = dma.hbm_to_vmem [thread:$0]  (!%p1057_p5), %s1220_s6, 16, %s1063_s11, [#allocation5]  }
  0x4c   : > { %p1229_p6 = scmp.ne.s32.totalorder %s1226_s27, 0 }
  0x4d   : > { %p1230_p7 = scmp.ne.s32.totalorder (!%p1229_p6), %s1225_s26, 0 }
  0x4e   : > { %272 = sbr.rel (%p1229_p6) target bundleno = 756 (0x2f4), region = 48 }
  0x55   : > { %977 = dma.done.wait (%p1230_p7), [#allocation3], 128  }
  0x56   : > { %979 = vsyncadd (%p1230_p7), [#allocation3], 4294967168 }
  0x57   : > { %981 = dma.done.wait (%p1230_p7), [#allocation5], 1040  }
  0x58   : > { %983 = vsyncadd (%p1230_p7), [#allocation5], 4294966256  ;;  %s726_s9 = sshll.u32 %s715_s25, 1  ;;  %v993_v0 = vmov 0.0   ;;  %vm994_vm0 = vmmov 0   ;;  %v871_v1 = vld [vmem:[#allocation2] sm:$0xff]  }
  0x59   : > { %782 = vmatprep.subr.bf16.mxu0 %v993_v0  ;;  %784 = vmatprep.mubr.msk.bf16.mxu0 %vm994_vm0, %v993_v0  ;;  %p313_p5 = scmp.lt.s32.totalorder %s726_s9, 3  ;;  %vm343_vm1 = vcmask 130048   ;;  %v872_v5 = vld [vmem:[%s1217_s3] sm:$0xff]   ;;  %v873_v6 = vld [vmem:[%s1217_s3 + $0x8] sm:$0xff]   ;;  %v874_v7 = vld [vmem:[%s1217_s3 + $0x10] sm:$0xff]  }
  0x5a   : > { %788 = vmatprep.subr.bf16.mxu1 %v993_v0  ;;  %804 = vmatprep.mubr.msk.bf16.mxu1 %vm994_vm0, %v993_v0  ;;  %v875_v8 = vld [vmem:[%s1217_s3 + $0x18] sm:$0xff]   ;;  %v876_v9 = vld [vmem:[%s1217_s3 + $0x20] sm:$0xff]   ;;  %v877_v10 = vld [vmem:[%s1217_s3 + $0x28] sm:$0xff]  }
  0x5b   : > { %s1232_s9 = smov (!%p313_p5, %s726_s9), 3  ;;  %783 = vmatpush3.bf16.msra.mxu0 %v871_v1  ;;  %789 = vmatpush3.bf16.msra.mxu1 %v872_v5  ;;  %v878_v11 = vld [vmem:[%s1217_s3 + $0x30] sm:$0xff]   ;;  %v879_v12 = vld [vmem:[%s1217_s3 + $0x38] sm:$0xff]   ;;  %v880_v13 = vld [vmem:[#allocation4] sm:$0xff]  }
  0x5c   : > { %s727_s26 = sshll.u32 %s1232_s9, 3  ;;  %808 = vmatprep.subr.bf16.mxu0 %v993_v0  ;;  %790 = vmatprep.subr.bf16.mxu1 %v993_v0  ;;  %v881_v14 = vld [vmem:[#allocation4 + $0x8] sm:$0xff]   ;;  %v882_v15 = vld [vmem:[#allocation4 + $0x10] sm:$0xff]   ;;  %v883_v16 = vld [vmem:[#allocation4 + $0x18] sm:$0xff]  }
  0x5d   : > { %s316_s25 = scalar_lea.vmem %s1214_s0, %s727_s26  ;;  %v884_v17 = vld [vmem:[#allocation4 + $0x20] sm:$0xff]   ;;  %v885_v18 = vld [vmem:[#allocation4 + $0x28] sm:$0xff]   ;;  %v730_v19 = vld [vmem:[%s1216_s2] ss:$0 sm:$0xff] }
  0x5e   : > { %v325_v2 = vld [vmem:[%s316_s25] sm:$0xff]  ;;  %v326_v3 = vld [vmem:[%s316_s25 + $0x8] sm:$0xff]  ;;  %v886_v29 = vld [vmem:[#allocation4 + $0x30] sm:$0xff]   ;;  %s729_s25 = sshll.u32 %s1232_s9, 2 }
  0x5f   : > { %v327_v4 = vpack.c.bf16 %v326_v3, %v325_v2  ;;  %791 = vmatpush3.bf16.msra.mxu1 %v873_v6  ;;  %v887_v30 = vld [vmem:[#allocation4 + $0x38] sm:$0xff]   ;;  %v742_v41 = vld [vmem:[#allocation6] ss:$0 sm:$0xff]  ;;  %s322_s16 = scalar_lea.vmem %s1221_s7, %s729_s25 }
  0x60   : > { %792 = vmatprep.subr.bf16.mxu1 %v993_v0  ;;  %v733_v31 = vld [vmem:[%s1218_s4] ss:$0 sm:$0xff] }
  0x61   : > { %785 = vmatmul.mubr.msk.bf16.vlgmr.msra.gmra.mrb[0].mxu0 %vm343_vm1, %v327_v4 }
  0x62   : > { %824 = vmatprep.mubr.msk.bf16.mxu0 %vm994_vm0, %v993_v0  ;;  %809 = vmatpush3.bf16.msra.mxu0 %v880_v13 }
  0x63   : > { %793 = vmatpush3.bf16.msra.mxu1 %v874_v7  ;;  %810 = vmatprep.subr.bf16.mxu0 %v993_v0 }
  0x64   : > { %794 = vmatprep.subr.bf16.mxu1 %v993_v0 }
  0x66   : > { %811 = vmatpush3.bf16.msra.mxu0 %v881_v14 }
  0x67   : > { %795 = vmatpush3.bf16.msra.mxu1 %v875_v8  ;;  %812 = vmatprep.subr.bf16.mxu0 %v993_v0 }
  0x68   : > { %796 = vmatprep.subr.bf16.mxu1 %v993_v0 }
  0x6a   : > { %813 = vmatpush3.bf16.msra.mxu0 %v882_v15 }
  0x6b   : > { %797 = vmatpush3.bf16.msra.mxu1 %v876_v9  ;;  %814 = vmatprep.subr.bf16.mxu0 %v993_v0 }
  0x6c   : > { %798 = vmatprep.subr.bf16.mxu1 %v993_v0 }
  0x6e   : > { %815 = vmatpush3.bf16.msra.mxu0 %v883_v16 }
  0x6f   : > { %799 = vmatpush3.bf16.msra.mxu1 %v877_v10  ;;  %816 = vmatprep.subr.bf16.mxu0 %v993_v0 }
  0x70   : > { %800 = vmatprep.subr.bf16.mxu1 %v993_v0 }
  0x72   : > { %817 = vmatpush3.bf16.msra.mxu0 %v884_v17 }
  0x73   : > { %801 = vmatpush3.bf16.msra.mxu1 %v878_v11  ;;  %818 = vmatprep.subr.bf16.mxu0 %v993_v0 }
  0x74   : > { %802 = vmatprep.subr.bf16.mxu1 %v993_v0 }
  0x76   : > { %819 = vmatpush3.bf16.msra.mxu0 %v885_v18 }
  0x77   : > { %803 = vmatpush3.bf16.msra.mxu1 %v879_v12  ;;  %820 = vmatprep.subr.bf16.mxu0 %v993_v0 }
  0x7a   : > { %821 = vmatpush3.bf16.msra.mxu0 %v886_v29 }
  0x7b   : > { %822 = vmatprep.subr.bf16.mxu0 %v993_v0 }
  0x7e   : > { %823 = vmatpush3.bf16.msra.mxu0 %v887_v30 }
 0x134   : > { %v381_v20 = vpop.f32.mrb[0].mxu0 }
 0x135   : > { %v382_v21 = vadd.f32 %v730_v19, %v381_v20  ;;  %v786_v22 = vpop.f32.mrb[1].mxu0 }
 0x136   : > { %v384_v23 = vpop.f32.mrb[2].mxu0 }
 0x137   : > { %v385_v24 = vadd.f32 %v730_v19, %v384_v23  ;;  %v787_v25 = vpop.f32.mrb[3].mxu0  ;;  %v388_v26 = vmax.f32 %v382_v21, 0.0 }
 0x139   : > { %v389_v27 = vmax.f32 %v385_v24, 0.0 }
 0x13b   : > { %v390_v28 = vpack.c.bf16 %v389_v27, %v388_v26 }
 0x13d   : > { %805 = vmatmul.mubr.bf16.vlgmr.msra.gmra.mrb[0].mxu1 %v390_v28 }
 0x210   : > { %v496_v32 = vpop.f32.mrb[0].mxu1 }
 0x211   : > { %v497_v33 = vadd.f32 %v733_v31, %v496_v32  ;;  %v806_v34 = vpop.f32.mrb[1].mxu1 }
 0x212   : > { %v499_v35 = vpop.f32.mrb[2].mxu1 }
 0x213   : > { %v500_v36 = vadd.f32 %v733_v31, %v499_v35  ;;  %v807_v37 = vpop.f32.mrb[3].mxu1  ;;  %v503_v38 = vmax.f32 %v497_v33, 0.0 }
 0x215   : > { %v504_v39 = vmax.f32 %v500_v36, 0.0 }
 0x217   : > { %v505_v40 = vpack.c.bf16 %v504_v39, %v503_v38 }
 0x219   : > { %825 = vmatmul.mubr.bf16.vlgmr.msra.gmra.mrb[4].mxu0 %v505_v40 }
 0x2ec   : > { %v611_v42 = vpop.f32.mrb[4].mxu0 }
 0x2ed   : > { %v826_v43 = vpop.f32.mrb[5].mxu0  ;;  %v612_v45 = vadd.f32 %v742_v41, %v611_v42 }
 0x2ee   : > { %v614_v44 = vpop.f32.mrb[6].mxu0 }
 0x2ef   : > { %v615_v46 = vadd.f32 %v742_v41, %v614_v44  ;;  %v827_v47 = vpop.f32.mrb[7].mxu0 }
 0x2f1   : > { %v760_v48 = vpack.c.bf16 %v615_v46, %v612_v45 }
 0x2f3   : > { %761 = vst [vmem:[%s322_s16] sm:$0xff] %v760_v48  }
 0x2f4 PF: > { %s19_s24 = sadd.s32 1, %s986_s24  }
 0x2f5   : > { %p16_p2 = scmp.ge.s32.totalorder %s19_s24, 4  }
 0x2f7   :  { %18 = sbr.rel (!%p16_p2) target bundleno = 2 (0x2), region = 91 }
 0x2fe   :  { %650 = vsyncpa [#allocation3], 1 }
 0x2ff   :  { %652 = vsyncpa [#allocation3 + $0x1], 1 }
 0x300   :  { %653 = vsyncpa [#allocation5], 1 }

</bundles_post_ra>
